<compile_context>
chip_gen: v7x
topology: tpu7x:2x2x1
jax: 0.10.0
libtpu: 0.0.40
codegen_flags: <defaults>
</compile_context>

<pallas_src>
import functools

import jax
import jax.numpy as jnp
from jax.experimental import pallas as pl
from jax.experimental.pallas import tpu as pltpu


def _rmsnorm_kernel(x_ref, w_ref, o_ref, *, eps: float):
    x = x_ref[...]                                     # (tm, H), original dtype
    x_f32 = x.astype(jnp.float32)                      # .to(torch.float32)
    variance = jnp.mean(x_f32 * x_f32, axis=-1, keepdims=True)   # fp32 mean(-1)
    inv = jax.lax.rsqrt(variance + eps)                # fp32 rsqrt (EUP)
    # TODO(synk): if profiling on v7x shows the VALU slot saturating, compute
    # the sum of squares via jnp.dot(x_f32 * x_f32, ones((H, 1))) to offload
    # the lane reduction onto the idle MXU.
    y = (x_f32 * inv).astype(o_ref.dtype)              # cast to weight/out dtype
    o_ref[...] = (w_ref[...] * y).astype(o_ref.dtype)  # weight * x


def _round_up(x: int, m: int) -> int:
    return ((x + m - 1) // m) * m


def _cdiv(a: int, b: int) -> int:
    return (a + b - 1) // b


def _vmem_capacity_bytes() -> int:
    """Physical VMEM per TensorCore, with a generation-aware fallback."""
    try:
        return int(pltpu.get_tpu_info().vmem_capacity_bytes)
    except Exception:
        pass
    try:
        kind = jax.devices()[0].device_kind.lower()
        if "v7" in kind:
            return 64 * 1024 * 1024
    except Exception:
        pass
    return 128 * 1024 * 1024                           # v5e / v6e


def _choose_row_tile(rows: int, hidden: int, in_itemsize: int, out_itemsize: int):
    """Pick the row tile from a VMEM budget; returns (tm, vmem_cap, per_row)."""
    # Sublane packing keyed off the NARROWEST dtype touching a tiled block
    # (fp32 input + bf16 output still needs 16-row packing for the output).
    sublane = 16 if min(in_itemsize, out_itemsize) <= 2 else 8

    vmem_cap = _vmem_capacity_bytes()
    # Tighter budget on 64 MiB parts (v7x); leave room for compiler scratch,
    # semaphores and the double-buffered weight row.
    budget = vmem_cap // 3 if vmem_cap <= (64 << 20) else vmem_cap // 2

    # Per-row VMEM: double-buffered input + output tiles plus ~3 live fp32
    # intermediates (x_f32, x_f32*x_f32, scaled y) during compute.
    per_row = hidden * (2 * in_itemsize + 2 * out_itemsize + 3 * 4)

    cap = max(sublane, budget // max(per_row, 1))
    cap = min(cap, 1024)                               # past the roofline knee
    cap = max((cap // sublane) * sublane, sublane)

    tm = min(cap, _round_up(rows, sublane))
    # Guarantee >=2 grid steps whenever rows allow it, so the "parallel" row
    # axis actually shards across both v7x TensorCores.
    if rows > sublane:
        tm = min(tm, _round_up(_cdiv(rows, 2), sublane))
    tm = max(tm, sublane)
    return tm, vmem_cap, per_row


def quantized_llama_rmsnorm(hidden_states: jax.Array,
                            weight: jax.Array,
                            variance_epsilon: float) -> jax.Array:
    """RMSNorm over the last axis of `hidden_states`, scaled by `weight`.

    hidden_states: (..., H), bf16 / fp16 / fp32.
    weight:        (H,).
    """
    orig_shape = hidden_states.shape
    H = orig_shape[-1]
    x2d = hidden_states.reshape(-1, H)                 # (rows, H)
    rows = x2d.shape[0]

    # Output dtype follows the PyTorch module: cast to weight dtype only for
    # half-precision weights, otherwise the fp32 promotion carries through.
    if weight.dtype in (jnp.float16, jnp.bfloat16):
        out_dtype = weight.dtype
    else:
        out_dtype = jnp.promote_types(weight.dtype, jnp.float32)

    in_itemsize = jnp.dtype(hidden_states.dtype).itemsize
    out_itemsize = jnp.dtype(out_dtype).itemsize
    w_itemsize = jnp.dtype(weight.dtype).itemsize
    tm, vmem_cap, per_row = _choose_row_tile(rows, H, in_itemsize, out_itemsize)

    # Ragged final tile is handled by Pallas (masked input read / output
    # writeback); no external pad + slice HBM passes.
    grid = (pl.cdiv(rows, tm),)

    w2d = weight.reshape(1, H)

    kernel = functools.partial(_rmsnorm_kernel, eps=float(variance_epsilon))

    # Scoped VMEM limit: enough for the chosen double-buffered tiles plus a
    # little margin, never past 85% of physical VMEM.
    needed = tm * per_row + 2 * H * w_itemsize + (4 << 20)
    vmem_limit = int(max(min(needed, int(0.85 * vmem_cap)), 16 << 20))

    cost = pl.CostEstimate(
        flops=4 * rows * H,                            # square, sum, scale, weight-mul
        transcendentals=rows,                          # one rsqrt per row
        bytes_accessed=rows * H * (in_itemsize + out_itemsize)
        + H * w_itemsize,
    )

    out2d = pl.pallas_call(
        kernel,
        out_shape=jax.ShapeDtypeStruct((rows, H), out_dtype),
        grid_spec=pltpu.PrefetchScalarGridSpec(
            num_scalar_prefetch=0,
            grid=grid,
            in_specs=[
                pl.BlockSpec((tm, H), lambda i: (i, 0)),   # activation tile
                pl.BlockSpec((1, H), lambda i: (0, 0)),    # broadcast weight row
            ],
            out_specs=pl.BlockSpec((tm, H), lambda i: (i, 0)),
        ),
        compiler_params=pltpu.CompilerParams(
            dimension_semantics=("parallel",),         # rows shard over v7x's 2 TCs
            vmem_limit_bytes=vmem_limit,
        ),
        cost_estimate=cost,
    )(x2d, w2d)

    return out2d.reshape(orig_shape[:-1] + (H,)).astype(out_dtype).reshape(orig_shape)


def _reference_rmsnorm(hidden_states, weight, eps):
    x_f32 = hidden_states.astype(jnp.float32)
    variance = jnp.mean(x_f32 * x_f32, axis=-1, keepdims=True)
    y = x_f32 * jax.lax.rsqrt(variance + eps)
    if weight.dtype in (jnp.float16, jnp.bfloat16):
        y = y.astype(weight.dtype)
    return weight * y


if __name__ == "__main__":
    eps = 1e-6
    key = jax.random.PRNGKey(0)
    kx, kw, kx2, kx3 = jax.random.split(key, 4)

    batch, seq, hidden = 2, 8, 32
    hidden_states = jax.random.normal(kx, (batch, seq, hidden),
                                      dtype=jnp.float32).astype(jnp.bfloat16)
    weight = (jnp.ones((hidden,), dtype=jnp.float32)
              + 0.1 * jax.random.normal(kw, (hidden,), dtype=jnp.float32)
              ).astype(jnp.bfloat16)

    out = quantized_llama_rmsnorm(hidden_states, weight, eps)
    out = jax.block_until_ready(out)
    ref = _reference_rmsnorm(hidden_states, weight, eps)
    assert out.shape == hidden_states.shape
    assert out.dtype == weight.dtype
    assert jnp.allclose(out.astype(jnp.float32), ref.astype(jnp.float32),
                        atol=1e-2, rtol=1e-2)

    # Awkward row count (exercises the ragged final tile, no padding pass).
    hs2 = jax.random.normal(kx2, (1, 5, hidden),
                            dtype=jnp.float32).astype(jnp.bfloat16)
    out2 = jax.block_until_ready(quantized_llama_rmsnorm(hs2, weight, eps))
    ref2 = _reference_rmsnorm(hs2, weight, eps)
    assert out2.shape == hs2.shape
    assert jnp.allclose(out2.astype(jnp.float32), ref2.astype(jnp.float32),
                        atol=1e-2, rtol=1e-2)

    # fp32 activations with bf16 weight (exercises the mixed-dtype sublane rule).
    hs3 = jax.random.normal(kx3, (3, 7, hidden), dtype=jnp.float32)
    out3 = jax.block_until_ready(quantized_llama_rmsnorm(hs3, weight, eps))
    ref3 = _reference_rmsnorm(hs3, weight, eps)
    assert out3.shape == hs3.shape
    assert out3.dtype == weight.dtype
    assert jnp.allclose(out3.astype(jnp.float32), ref3.astype(jnp.float32),
                        atol=1e-2, rtol=1e-2)

    print("KERNEL_OK")
</pallas_src>

<mosaic_0001>
module attributes {stable_mosaic.version = 11 : i64} {
  func.func @_rmsnorm_kernel(%arg0: i32, %arg1: memref<16x32xbf16, #tpu.memory_space<vmem>>, %arg2: memref<1x32xbf16, #tpu.memory_space<vmem>>, %arg3: memref<16x32xbf16, #tpu.memory_space<vmem>>) attributes {dimension_semantics = [#tpu.dimension_semantics<parallel>], iteration_bounds = array<i64: 1>, scalar_prefetch = 0 : i64, scratch_operands = 0 : i64, tpu.core_type = #tpu.core_type<tc>, window_params = [{transform_indices = @transform_0, window_bounds = array<i64: 16, 32>}, {pipeline_mode = #tpu.pipeline_mode<synchronous>, transform_indices = @transform_1, window_bounds = array<i64: 1, 32>}, {transform_indices = @transform_2, window_bounds = array<i64: 16, 32>}]} {
    %c0 = arith.constant 0 : index
    %c0_0 = arith.constant 0 : index
    %0 = vector.load %arg1[%c0, %c0_0] : memref<16x32xbf16, #tpu.memory_space<vmem>>, vector<16x32xbf16>
    %1 = arith.extf %0 : vector<16x32xbf16> to vector<16x32xf32>
    %2 = arith.mulf %1, %1 : vector<16x32xf32>
    %cst = arith.constant dense<0.000000e+00> : vector<16xf32>
    %3 = vector.multi_reduction <add>, %2, %cst [1] : vector<16x32xf32> to vector<16xf32>
    %4 = vector.shape_cast %3 : vector<16xf32> to vector<16x1xf32>
    %cst_1 = arith.constant 3.200000e+01 : f32
    %5 = vector.broadcast %cst_1 : f32 to vector<16x1xf32>
    %6 = arith.divf %4, %5 : vector<16x1xf32>
    %cst_2 = arith.constant 9.99999997E-7 : f32
    %7 = vector.broadcast %cst_2 : f32 to vector<16x1xf32>
    %8 = arith.addf %6, %7 : vector<16x1xf32>
    %9 = math.rsqrt %8 : vector<16x1xf32>
    %10 = vector.broadcast %9 : vector<16x1xf32> to vector<16x32xf32>
    %11 = arith.mulf %1, %10 : vector<16x32xf32>
    %12 = arith.truncf %11 : vector<16x32xf32> to vector<16x32xbf16>
    %c0_3 = arith.constant 0 : index
    %c0_4 = arith.constant 0 : index
    %13 = vector.load %arg2[%c0_3, %c0_4] : memref<1x32xbf16, #tpu.memory_space<vmem>>, vector<1x32xbf16>
    %14 = vector.broadcast %13 : vector<1x32xbf16> to vector<16x32xbf16>
    %15 = arith.mulf %14, %12 : vector<16x32xbf16>
    %c0_5 = arith.constant 0 : index
    %c0_6 = arith.constant 0 : index
    %16 = vector.load %arg3[%c0_5, %c0_6] : memref<16x32xbf16, #tpu.memory_space<vmem>>, vector<16x32xbf16>
    tpu.vector_store %arg3[%c0_5, %c0_6], %15 {strides = array<i32>} : memref<16x32xbf16, #tpu.memory_space<vmem>>, vector<16x32xbf16>,
    return
  }
  func.func @transform_0(%arg0: i32) -> (i32, i32) {
    %c0_i32 = arith.constant 0 : i32
    %c0_i32_0 = arith.constant 0 : i32
    return %arg0, %c0_i32 : i32, i32
  }
  func.func @transform_1(%arg0: i32) -> (i32, i32) {
    %c0_i32 = arith.constant 0 : i32
    %c0_i32_0 = arith.constant 0 : i32
    %c0_i32_1 = arith.constant 0 : i32
    return %c0_i32, %c0_i32_0 : i32, i32
  }
  func.func @transform_2(%arg0: i32) -> (i32, i32) {
    %c0_i32 = arith.constant 0 : i32
    %c0_i32_0 = arith.constant 0 : i32
    return %arg0, %c0_i32 : i32, i32
  }
}

</mosaic_0001>

<bundles_post_ra>
// kernel: tpu_custom_call.1
= control target key start
LH: loop header
LB: loop body
LE: loop exit
PB: predicated region body
PF: predicated region fallthrough
CT: control target
= control target key end

     0   :  { %7 = vsyncpa [#allocation3], 0  ;;  %s199_s0 = inlined_call_operand.hbm [shape: bf16[16,32], index: 0, kind: input, shape index: {}]   ;;  %s200_s1 = inlined_call_operand.vmem [shape: bf16[1,32], index: 1, kind: input, shape index: {}]   ;;  %s201_s2 = inlined_call_operand.hbm [shape: bf16[16,32], index: 2, kind: output, shape index: {}]  }
   0x1   :  { %8 = vsyncpa [#allocation4], 0  ;;  %s147_s9 = smov [#allocation2]   ;;  %s99_s13 = scalar_lea.hbm %s199_s0, 128 }
   0x2   :  { %s14_s10 = sshll.u32 %s147_s9, 4  ;;  %p100_p0 = scmp.ne.s32.totalorder %s199_s0, %s99_s13  ;;  %s15_s10 = int_to_ptr.vmem [resolvable:$true] %s14_s10 }
   0x3   :  { %p103_p1 = scmp.lt.u32.totalorder %s99_s13, %s199_s0 }
   0x5   :  { %p105_p2 = pnand %p103_p1, %p100_p0 }
   0x7   :  { %108 = shalt.err (!%p105_p2)
}
   0x8   :  { %s109_s18 = scalar_lea.vmem %s15_s10, 128  ;;  %p114_p4 = scmp.lt.s32.totalorder %s15_s10, %s15_s10 }
   0x9   :  { %p110_p3 = scmp.ne.s32.totalorder %s15_s10, %s109_s18  ;;  %p115_p5 = scmp.lt.s32.totalorder %s109_s18, %s109_s18 }
   0xb   :  { %p116_p6 = por %p115_p5, %p114_p4 }
   0xd   :  { %p117_p7 = pnand %p116_p6, %p110_p3 }
   0xf   :  { %120 = shalt.err (!%p117_p7)
}
  0x10   :  { %s148_s19 = smov 64   ;;  %s149_s20 = smov 4  }
  0x11   :  { %20 = dma.hbm_to_vmem [thread:$0]  %s199_s0, 128, %s15_s10, [#allocation3], %s148_s19, %s148_s19, %s149_s20  }
  0x12   :  { %143 = dma.done.wait [#allocation3], 128  }
  0x13   :  { %144 = vsyncadd [#allocation3], 4294967168  ;;  %v88_v0 = vld [vmem:[#allocation2] sm:$0xff]   ;;  %vm32_vm0 = vcmask 261120   ;;  %v53_v13 = vlaneseq  ;;  %s150_s24 = smov [#allocation5]   ;;  %vm65_vm1 = vcmask 257024  }
  0x14   :  { %v89_v1 = vunpack.c.l.bf16 %v88_v0  ;;  %v90_v2 = vunpack.c.h.bf16 %v88_v0  ;;  %v49_v15 = vld [vmem:[%s200_s1] sm:$0x1]  ;;  %s73_s25 = sshll.u32 %s150_s24, 4  ;;  %s74_s25 = int_to_ptr.vmem [resolvable:$true] %s73_s25 }
  0x15   :  { %v54_v14 = vshrl.u32 %v53_v13, 7  ;;  %v51_v16 = vpack.i.b16 %v49_v15, %v49_v15  ;;  %s121_s26 = scalar_lea.vmem %s74_s25, 128  ;;  %p126_p9 = scmp.lt.s32.totalorder %s74_s25, %s74_s25 }
  0x16   :  { %v30_v3 = vmul.f32 %v89_v1, %v89_v1  ;;  %v31_v4 = vmul.f32 %v90_v2, %v90_v2  ;;  %p122_p8 = scmp.ne.s32.totalorder %s74_s25, %s121_s26  ;;  %p127_p10 = scmp.lt.s32.totalorder %s121_s26, %s121_s26 }
  0x17   :  { %v55_v17 = vsub.s32 0, %v54_v14 }
  0x18   :  { %v33_v5 = vsel %vm32_vm0, %v30_v3, 0.0  ;;  %v36_v6 = vsel %vm32_vm0, %v31_v4, 0.0  ;;  %p128_p11 = por %p127_p10, %p126_p9 }
  0x19   :  { %34 = vadd.xlane.f32.xlu0 %v33_v5  ;;  %v56_v22 = vrot.slane %v51_v16, %v55_v17 }
  0x1a   :  { %p129_p12 = pnand %p128_p11, %p122_p8 }
  0x1d   :  { %37 = vadd.xlane.f32.xlu0 %v36_v6 }
  0xa6   :  { %v35_v7 = vpop.xlane.xlu0 %34 }
  0xa7   :  { %v40_v8 = vmul.f32 0.03125, %v35_v7 }
  0xa9   :  { %v42_v9 = vadd.f32 1e-06, %v40_v8 }
  0xaa   :  { %v38_v10 = vpop.xlane.xlu0 %37 }
  0xab   :  { %v41_v11 = vmul.f32 0.03125, %v38_v10  ;;  %95 = vrsqrt.f32 %v42_v9 }
  0xad   :  { %v43_v12 = vadd.f32 1e-06, %v41_v11 }
  0xaf   :  { %97 = vrsqrt.f32 %v43_v12 }
  0xb5   :  { %v96_v18 = vpop.eup %95 }
  0xb6   :  { %v46_v20 = vmul.f32 %v96_v18, %v89_v1 }
  0xb9   :  { %v98_v19 = vpop.eup %97 }
  0xba   :  { %v47_v21 = vmul.f32 %v98_v19, %v90_v2 }
  0xbc   :  { %v48_v23 = vpack.c.bf16 %v47_v21, %v46_v20 }
  0xbe   :  { %v57_v24 = vmul.bf16 %v56_v22, %v48_v23 }
  0xc0   :  { %v85_v25 = vcombine.low %v57_v24, %v57_v24  ;;  %v86_v26 = vcombine.high %v57_v24, %v57_v24 }
  0xc2   :  { %66 = vst.msk [vmem:[#allocation5] sm:$0xf] %vm65_vm1, %v85_v25  ;;  %67 = vst.msk [vmem:[#allocation5 + $0x4] sm:$0xf] %vm65_vm1, %v86_v26 }
  0xc3   :  { %132 = shalt.err (!%p129_p12)
}
  0xc4   :  { %s133_s28 = scalar_lea.hbm %s201_s2, 128 }
  0xc5   :  { %p134_p13 = scmp.ne.s32.totalorder %s201_s2, %s133_s28  ;;  %p137_p0 = scmp.lt.u32.totalorder %s133_s28, %s201_s2 }
  0xc7   :  { %p139_p1 = pnand %p137_p0, %p134_p13 }
  0xc9   :  { %142 = shalt.err (!%p139_p1)
}
  0xca   :  { %79 = dma.vmem_to_hbm [thread:$0]  %s74_s25, 128, %s201_s2, [#allocation4], %s148_s19, %s148_s19, %s149_s20  }
  0xcb   :  { %145 = dma.done.wait [#allocation4], 128  }
  0xcc   :  { %146 = vsyncadd [#allocation4], 4294967168 }
  0xcd   :  { %83 = vsyncpa [#allocation3], 1 }
  0xce   :  { %84 = vsyncpa [#allocation4], 1 }

</bundles_post_ra>
